<compile_context>
chip_gen: v5e
topology: v5e:2x2
jax: 0.10.0
libtpu: 0.0.40
codegen_flags: <defaults>
</compile_context>

<pallas_src>
import functools

import jax
import jax.numpy as jnp
from jax.experimental import pallas as pl
from jax.experimental.pallas import tpu as pltpu


# --------------------------------------------------------------------------
# Hardware-aware constants
# --------------------------------------------------------------------------

_DEFAULT_VMEM_CAP = 128 * 1024 * 1024


def _round_up(x, m):
    return -(-x // m) * m


@functools.lru_cache(maxsize=None)
def _vmem_limits():
    """(vmem_limit_bytes, tile_budget_bytes) derived from the chip's VMEM capacity."""
    cap = _DEFAULT_VMEM_CAP
    try:
        info = pltpu.get_tpu_info()
        cap = int(getattr(info, "vmem_capacity_bytes", cap)) or cap
    except Exception:
        pass
    limit = min(int(0.75 * cap), cap - 8 * 1024 * 1024)   # 96 MiB on 128 MiB, 48 MiB on 64 MiB
    limit = max(limit, 32 * 1024 * 1024)
    budget = int(0.75 * limit)                             # 72 MiB / 36 MiB tile budget
    return limit, budget


@functools.lru_cache(maxsize=None)
def _mxu_granularity():
    """MXU contraction granularity: 128 on v4/v5-class chips, 256 on v6e/v7x."""
    try:
        kind = jax.devices()[0].device_kind.lower()
    except Exception:
        return 256
    if "v4" in kind or "v5" in kind:
        return 128
    return 256


def _should_fuse(K, N, rank, itemsize):
    """Fuse the rank-R double matmul into one (K,N) contraction iff the fused path
    issues no more padded MXU tiles than the two-matmul path (f32 counts double)."""
    g = _mxu_granularity()
    kp = -(-K // g)
    np_ = -(-N // g)
    fused_tiles = kp * np_
    two_mm_tiles = kp + np_            # rank (<= g) pads to one MXU tile per matmul
    if itemsize >= 4:
        fused_tiles *= 2               # f32: 2x streamed bytes, no fast MXU path on v5e/v6e
    return fused_tiles <= two_mm_tiles


def _pick_tile(total, io_bytes_per_unit, scratch_bytes_per_unit, fixed_bytes, *,
               max_tile, budget_bytes, align, min_steps=4, floor=256):
    """Largest power-of-two tile whose double-buffered IO + per-tile f32 scratch +
    resident weights fit the VMEM budget; capped so the grid keeps >= min_steps when
    the dim is large enough to split (pipelining + megacore), with a size floor."""
    def footprint(t):
        return fixed_bytes + t * (2 * io_bytes_per_unit + scratch_bytes_per_unit)

    tile = min(128, max_tile)
    while tile * 2 <= max_tile and footprint(tile * 2) <= budget_bytes:
        tile *= 2
    if total >= min_steps * align:
        cap = _round_up(pl.cdiv(total, min_steps), align)
        cap = max(cap, floor)
        tile = min(tile, cap)
    return max(1, min(tile, total))


# --------------------------------------------------------------------------
# Kernel bodies (built per has_base flag so the residual add is fused in-kernel)
# --------------------------------------------------------------------------

def _make_rows_fused_kernel(has_base):
    if has_base:
        def kernel(x_ref, w_ref, b_ref, o_ref):
            acc = jnp.dot(x_ref[...], w_ref[...], preferred_element_type=jnp.float32)
            acc = acc + b_ref[...].astype(jnp.float32)
            o_ref[...] = acc.astype(o_ref.dtype)
    else:
        def kernel(x_ref, w_ref, o_ref):
            o_ref[...] = jnp.dot(x_ref[...], w_ref[...],
                                 preferred_element_type=jnp.float32).astype(o_ref.dtype)
    return kernel


def _make_rows_two_mm_kernel(has_base):
    if has_base:
        def kernel(x_ref, wd_ref, wu_ref, b_ref, o_ref):
            down = jnp.dot(x_ref[...], wd_ref[...], preferred_element_type=jnp.float32)
            acc = jnp.dot(down.astype(wu_ref.dtype), wu_ref[...],
                          preferred_element_type=jnp.float32)
            acc = acc + b_ref[...].astype(jnp.float32)
            o_ref[...] = acc.astype(o_ref.dtype)
    else:
        def kernel(x_ref, wd_ref, wu_ref, o_ref):
            down = jnp.dot(x_ref[...], wd_ref[...], preferred_element_type=jnp.float32)
            o_ref[...] = jnp.dot(down.astype(wu_ref.dtype), wu_ref[...],
                                 preferred_element_type=jnp.float32).astype(o_ref.dtype)
    return kernel


def _make_cf_fused_kernel(has_base):
    if has_base:
        def kernel(x_ref, w_ref, b_ref, o_ref):
            acc = jnp.dot(w_ref[...], x_ref[0], preferred_element_type=jnp.float32)
            acc = acc + b_ref[0].astype(jnp.float32)
            o_ref[0] = acc.astype(o_ref.dtype)
    else:
        def kernel(x_ref, w_ref, o_ref):
            o_ref[0] = jnp.dot(w_ref[...], x_ref[0],
                               preferred_element_type=jnp.float32).astype(o_ref.dtype)
    return kernel


def _make_cf_two_mm_kernel(has_base):
    if has_base:
        def kernel(x_ref, wd_ref, wu_ref, b_ref, o_ref):
            down = jnp.dot(wd_ref[...], x_ref[0], preferred_element_type=jnp.float32)
            acc = jnp.dot(wu_ref[...], down.astype(wu_ref.dtype),
                          preferred_element_type=jnp.float32)
            acc = acc + b_ref[0].astype(jnp.float32)
            o_ref[0] = acc.astype(o_ref.dtype)
    else:
        def kernel(x_ref, wd_ref, wu_ref, o_ref):
            down = jnp.dot(wd_ref[...], x_ref[0], preferred_element_type=jnp.float32)
            o_ref[0] = jnp.dot(wu_ref[...], down.astype(wu_ref.dtype),
                               preferred_element_type=jnp.float32).astype(o_ref.dtype)
    return kernel


# --------------------------------------------------------------------------
# Weight preparation (scale folded, pre-transposed; cached by the module class)
# --------------------------------------------------------------------------

def _prepare_linear_weights(w_down, w_up, scale, dtype, fuse):
    w_down = jnp.asarray(w_down)
    w_up = jnp.asarray(w_up)
    if fuse:
        w = scale * jnp.einsum("nr,rk->nk", w_up.astype(jnp.float32),
                               w_down.astype(jnp.float32),
                               precision=jax.lax.Precision.HIGHEST)
        return (w.T.astype(dtype),)                                  # (K, N)
    wd_t = w_down.T.astype(dtype)                                    # (K, R)
    wu_t = (scale * w_up.astype(jnp.float32)).T.astype(dtype)        # (R, N)
    return (wd_t, wu_t)


def _prepare_conv_weights(w_down, w_up, scale, dtype, fuse):
    w_down = jnp.asarray(w_down)
    w_up = jnp.asarray(w_up)
    if fuse:
        w = scale * jnp.einsum("nr,rc->nc", w_up.astype(jnp.float32),
                               w_down.astype(jnp.float32),
                               precision=jax.lax.Precision.HIGHEST)
        return (w.astype(dtype),)                                    # (N, C)
    wd = w_down.astype(dtype)                                        # (R, C)
    wu = (scale * w_up.astype(jnp.float32)).astype(dtype)            # (N, R)
    return (wd, wu)


# --------------------------------------------------------------------------
# Row-major path (Linear / tiny conv maps): x2d is (M, K), rows tiled on the grid.
# --------------------------------------------------------------------------

def _lora_rows(x2d, weights, *, fuse, base2d=None, max_tile=1024):
    M, K = x2d.shape
    dtype = x2d.dtype
    itemsize = dtype.itemsize
    vmem_limit, budget = _vmem_limits()
    has_base = base2d is not None

    if fuse:
        (w_t,) = weights                                             # (K, N)
        N = w_t.shape[1]
        fixed = 2 * K * _round_up(N, 128) * itemsize                 # double-buffered weight
        scratch_per_row = 4 * N                                      # f32 accumulator
    else:
        wd_t, wu_t = weights                                         # (K, R), (R, N)
        R = wd_t.shape[1]
        N = wu_t.shape[1]
        fixed = 2 * (K * _round_up(R, 128)
                     + _round_up(R, 8) * _round_up(N, 128)) * itemsize
        scratch_per_row = 4 * (_round_up(R, 128) + N)                # f32 'down' + f32 acc

    io_per_row = (K + N) * itemsize
    if has_base:
        io_per_row += N * itemsize                                   # streamed base read
    tm = _pick_tile(M, io_per_row, scratch_per_row, fixed,
                    max_tile=max_tile, budget_bytes=budget, align=8, floor=256)

    grid = (pl.cdiv(M, tm),)
    cparams = pltpu.CompilerParams(dimension_semantics=("parallel",),
                                   vmem_limit_bytes=vmem_limit)
    x_spec = pl.BlockSpec((tm, K), lambda i: (i, 0))
    # TODO(synk): out_features < 128 still emits lane-masked stores here; a transposed
    # (y^T) kernel would need an extra activation transpose and is not worth it yet.
    o_spec = pl.BlockSpec((tm, N), lambda i: (i, 0))
    out_shape = jax.ShapeDtypeStruct((M, N), dtype)

    if fuse:
        in_specs = [x_spec, pl.BlockSpec((K, N), lambda i: (0, 0))]
        args = [x2d, w_t]
        kernel = _make_rows_fused_kernel(has_base)
    else:
        in_specs = [x_spec,
                    pl.BlockSpec((K, R), lambda i: (0, 0)),
                    pl.BlockSpec((R, N), lambda i: (0, 0))]
        args = [x2d, wd_t, wu_t]
        kernel = _make_rows_two_mm_kernel(has_base)

    aliases = {}
    if has_base:
        in_specs.append(o_spec)
        args.append(base2d)
        aliases = {len(args) - 1: 0}                                 # base aliased to output

    return pl.pallas_call(
        kernel,
        out_shape=out_shape,
        grid=grid,
        in_specs=in_specs,
        out_specs=o_spec,
        input_output_aliases=aliases,
        compiler_params=cparams,
    )(*args)


# --------------------------------------------------------------------------
# Channels-first path (Conv 1x1): x is (B, C, H*W); H*W is the lane dimension.
# --------------------------------------------------------------------------

def _lora_cf(x_cf, weights, *, fuse, base_cf=None, max_tile=2048):
    B, C, HW = x_cf.shape
    dtype = x_cf.dtype
    itemsize = dtype.itemsize
    vmem_limit, budget = _vmem_limits()
    has_base = base_cf is not None

    if fuse:
        (w,) = weights                                               # (N, C)
        N = w.shape[0]
        fixed = 2 * _round_up(N, 8) * _round_up(C, 128) * itemsize
        scratch_per_col = 4 * N
    else:
        wd, wu = weights                                             # (R, C), (N, R)
        R = wd.shape[0]
        N = wu.shape[0]
        fixed = 2 * (_round_up(R, 8) * _round_up(C, 128)
                     + _round_up(N, 8) * _round_up(R, 128)) * itemsize
        scratch_per_col = 4 * (_round_up(R, 8) + N)

    io_per_col = (C + N) * itemsize
    if has_base:
        io_per_col += N * itemsize
    thw = _pick_tile(HW, io_per_col, scratch_per_col, fixed,
                     max_tile=max_tile, budget_bytes=budget, align=128, floor=512)

    grid = (B, pl.cdiv(HW, thw))
    cparams = pltpu.CompilerParams(dimension_semantics=("parallel", "parallel"),
                                   vmem_limit_bytes=vmem_limit)
    x_spec = pl.BlockSpec((1, C, thw), lambda b, j: (b, 0, j))
    o_spec = pl.BlockSpec((1, N, thw), lambda b, j: (b, 0, j))
    out_shape = jax.ShapeDtypeStruct((B, N, HW), dtype)

    if fuse:
        in_specs = [x_spec, pl.BlockSpec((N, C), lambda b, j: (0, 0))]
        args = [x_cf, w]
        kernel = _make_cf_fused_kernel(has_base)
    else:
        in_specs = [x_spec,
                    pl.BlockSpec((R, C), lambda b, j: (0, 0)),
                    pl.BlockSpec((N, R), lambda b, j: (0, 0))]
        args = [x_cf, wd, wu]
        kernel = _make_cf_two_mm_kernel(has_base)

    aliases = {}
    if has_base:
        in_specs.append(o_spec)
        args.append(base_cf)
        aliases = {len(args) - 1: 0}

    return pl.pallas_call(
        kernel,
        out_shape=out_shape,
        grid=grid,
        in_specs=in_specs,
        out_specs=o_spec,
        input_output_aliases=aliases,
        compiler_params=cparams,
    )(*args)


# --------------------------------------------------------------------------
# Functional wrappers
# --------------------------------------------------------------------------

def lora_forward_linear(x, w_down, w_up, alpha=None, multiplier=1.0, *,
                        base=None, fuse=None, compute_dtype=None):
    """Linear variant: x (..., in); w_down (rank, in), w_up (out, rank).
    Optional `base` (..., out) is added in-kernel via an aliased output buffer."""
    w_down = jnp.asarray(w_down)
    w_up = jnp.asarray(w_up)
    rank = w_down.shape[0]
    alpha = float(alpha) if alpha else float(rank)   # mirrors PyTorch `alpha or dim`
    scale = multiplier * (alpha / rank)

    x = x if compute_dtype is None else x.astype(compute_dtype)
    dtype = x.dtype
    K = x.shape[-1]
    N = w_up.shape[0]
    if fuse is None:
        fuse = _should_fuse(K, N, rank, dtype.itemsize)

    lead = x.shape[:-1]
    x2d = x.reshape(-1, K)
    b2d = base.astype(dtype).reshape(-1, N) if base is not None else None
    weights = _prepare_linear_weights(w_down, w_up, scale, dtype, fuse)
    y2d = _lora_rows(x2d, weights, fuse=fuse, base2d=b2d)
    return y2d.reshape(*lead, N)


def lora_forward_conv1x1(x_nchw, w_down, w_up, alpha=None, multiplier=1.0, *,
                         base=None, fuse=None, compute_dtype=None, max_tile=2048):
    """Conv 1x1 variant ('unet' + '_proj_'): x (B, C, H, W) NCHW.
    w_down (rank, C[,1,1]), w_up (out, rank[,1,1]). Stays channels-first (H*W = lanes);
    tiny maps (H*W < 128) route through the channels-last rows path for lane-dense stores."""
    w_down = jnp.asarray(w_down)
    w_up = jnp.asarray(w_up)
    if w_down.ndim == 4:
        w_down = w_down.reshape(w_down.shape[0], w_down.shape[1])
    if w_up.ndim == 4:
        w_up = w_up.reshape(w_up.shape[0], w_up.shape[1])
    rank = w_down.shape[0]
    alpha = float(alpha) if alpha else float(rank)   # mirrors PyTorch `alpha or dim`
    scale = multiplier * (alpha / rank)

    x = x_nchw if compute_dtype is None else x_nchw.astype(compute_dtype)
    dtype = x.dtype
    B, C, H, W = x.shape
    N = w_up.shape[0]
    HW = H * W
    if fuse is None:
        fuse = _should_fuse(C, N, rank, dtype.itemsize)

    if HW < 128:
        # Lane-density guard: H*W below one vreg lane width would force masked stores;
        # a one-time transpose of a tiny map is far cheaper.
        x_rows = jnp.transpose(x, (0, 2, 3, 1)).reshape(B * HW, C)
        b_rows = (jnp.transpose(base.astype(dtype), (0, 2, 3, 1)).reshape(B * HW, N)
                  if base is not None else None)
        weights = _prepare_linear_weights(w_down, w_up, scale, dtype, fuse)
        y = _lora_rows(x_rows, weights, fuse=fuse, base2d=b_rows)
        return jnp.transpose(y.reshape(B, H, W, N), (0, 3, 1, 2))

    weights = _prepare_conv_weights(w_down, w_up, scale, dtype, fuse)
    x_cf = x.reshape(B, C, HW)                       # pure view, no data movement
    b_cf = base.astype(dtype).reshape(B, N, HW) if base is not None else None
    y = _lora_cf(x_cf, weights, fuse=fuse, base_cf=b_cf, max_tile=max_tile)
    return y.reshape(B, N, H, W)                     # still NCHW, pure view


# --------------------------------------------------------------------------
# Module-style wrapper with cached prepared weights (matches PyTorch dispatch)
# --------------------------------------------------------------------------

class LoRAModule:
    """JAX/Pallas port of the PyTorch LoRAModule. Weight preprocessing (fuse, transpose,
    scale fold, dtype cast) is done once and cached across forward calls."""

    def __init__(self, name, lora_up, lora_down, alpha=None, multiplier=1.0,
                 compute_dtype=None):
        self.name = name
        self.is_conv = ("unet" in name) and ("_proj_" in name)
        w_up = jnp.asarray(lora_up)
        w_down = jnp.asarray(lora_down)
        if w_down.ndim == 4:
            w_down = w_down.reshape(w_down.shape[0], w_down.shape[1])
        if w_up.ndim == 4:
            w_up = w_up.reshape(w_up.shape[0], w_up.shape[1])
        self.w_up = w_up
        self.w_down = w_down
        self.rank = w_down.shape[0]
        # Mirrors PyTorch `torch.tensor(alpha or lora_down.shape[0])` (falsy alpha -> rank).
        self.alpha = float(alpha) if alpha else float(self.rank)
        self.multiplier = float(multiplier)
        self.scale = self.multiplier * (self.alpha / self.rank)
        self.compute_dtype = compute_dtype
        self._weight_cache = {}

    def _weights(self, dtype, fuse, conv_layout):
        key = (str(dtype), bool(fuse), bool(conv_layout))
        if key not in self._weight_cache:
            prep = _prepare_conv_weights if conv_layout else _prepare_linear_weights
            self._weight_cache[key] = prep(self.w_down, self.w_up, self.scale, dtype, fuse)
        return self._weight_cache[key]

    def __call__(self, x, base=None):
        x = x if self.compute_dtype is None else x.astype(self.compute_dtype)
        dtype = x.dtype
        N = self.w_up.shape[0]

        if self.is_conv:
            B, C, H, W = x.shape
            HW = H * W
            fuse = _should_fuse(C, N, self.rank, dtype.itemsize)
            if HW < 128:
                x_rows = jnp.transpose(x, (0, 2, 3, 1)).reshape(B * HW, C)
                b_rows = (jnp.transpose(base.astype(dtype), (0, 2, 3, 1)).reshape(B * HW, N)
                          if base is not None else None)
                y = _lora_rows(x_rows, self._weights(dtype, fuse, conv_layout=False),
                               fuse=fuse, base2d=b_rows)
                return jnp.transpose(y.reshape(B, H, W, N), (0, 3, 1, 2))
            x_cf = x.reshape(B, C, HW)
            b_cf = base.astype(dtype).reshape(B, N, HW) if base is not None else None
            y = _lora_cf(x_cf, self._weights(dtype, fuse, conv_layout=True),
                         fuse=fuse, base_cf=b_cf)
            return y.reshape(B, N, H, W)

        K = x.shape[-1]
        fuse = _should_fuse(K, N, self.rank, dtype.itemsize)
        lead = x.shape[:-1]
        x2d = x.reshape(-1, K)
        b2d = base.astype(dtype).reshape(-1, N) if base is not None else None
        y2d = _lora_rows(x2d, self._weights(dtype, fuse, conv_layout=False),
                         fuse=fuse, base2d=b2d)
        return y2d.reshape(*lead, N)


# --------------------------------------------------------------------------
# Self-test
# --------------------------------------------------------------------------

if __name__ == "__main__":
    key = jax.random.PRNGKey(0)
    ks = jax.random.split(key, 10)

    # ---------------- Linear LoRA (text-encoder / attention projection) ----------------
    in_f, rank, out_f = 32, 4, 32
    B, S = 2, 8
    x_lin = jax.random.normal(ks[0], (B, S, in_f), dtype=jnp.float32)
    wd_lin = jax.random.normal(ks[1], (rank, in_f), dtype=jnp.float32) * 0.02
    wu_lin = jax.random.normal(ks[2], (out_f, rank), dtype=jnp.float32) * 0.02
    alpha_lin = 1.0
    scale_lin = alpha_lin / rank
    ref_lin = ((x_lin @ wd_lin.T) @ wu_lin.T) * scale_lin

    y_fused = lora_forward_linear(x_lin, wd_lin, wu_lin, alpha_lin)
    y_2mm = lora_forward_linear(x_lin, wd_lin, wu_lin, alpha_lin, fuse=False)

    base_lin = jax.random.normal(ks[3], (B, S, out_f), dtype=jnp.float32)
    ref_lin_res = ref_lin + base_lin
    y_res = lora_forward_linear(x_lin, wd_lin, wu_lin, alpha_lin, base=base_lin)

    mod_lin = LoRAModule("lora_te_text_model_encoder_layers_0_self_attn_q_proj",
                         wu_lin, wd_lin, alpha_lin)
    y_mod_lin = mod_lin(x_lin)

    jax.block_until_ready((y_fused, y_2mm, y_res, y_mod_lin))
    assert y_fused.shape == ref_lin.shape
    # Tolerances account for TPU default matmul precision differences between paths.
    assert jnp.allclose(y_fused, ref_lin, rtol=5e-3, atol=5e-5)
    assert jnp.allclose(y_2mm, ref_lin, rtol=5e-3, atol=5e-5)
    assert jnp.allclose(y_res, ref_lin_res, rtol=5e-3, atol=5e-5)
    assert jnp.allclose(y_mod_lin, ref_lin, rtol=5e-3, atol=5e-5)

    # ---------------- Conv 1x1 LoRA ('unet' + '_proj_'), H*W >= 128 ----------------
    Cc, rank_c, out_c = 8, 4, 8
    Bc, Hc, Wc = 2, 16, 16
    x_conv = jax.random.normal(ks[4], (Bc, Cc, Hc, Wc), dtype=jnp.float32)
    wd_conv = jax.random.normal(ks[5], (rank_c, Cc), dtype=jnp.float32) * 0.02
    wu_conv = jax.random.normal(ks[6], (out_c, rank_c), dtype=jnp.float32) * 0.02
    alpha_conv = 1.0
    scale_conv = alpha_conv / rank_c
    x_perm = jnp.transpose(x_conv, (0, 2, 3, 1))
    ref_conv = jnp.transpose(((x_perm @ wd_conv.T) @ wu_conv.T) * scale_conv, (0, 3, 1, 2))

    mod_conv = LoRAModule("lora_unet_up_blocks_1_attentions_0_proj_in",
                          wu_conv, wd_conv, alpha_conv)
    y_conv = mod_conv(x_conv)
    y_conv_2mm = lora_forward_conv1x1(x_conv, wd_conv, wu_conv, alpha_conv, fuse=False)

    base_conv = jax.random.normal(ks[7], (Bc, out_c, Hc, Wc), dtype=jnp.float32)
    ref_conv_res = ref_conv + base_conv
    y_conv_res = lora_forward_conv1x1(x_conv, wd_conv, wu_conv, alpha_conv, base=base_conv)

    jax.block_until_ready((y_conv, y_conv_2mm, y_conv_res))
    assert y_conv.shape == ref_conv.shape
    assert jnp.allclose(y_conv, ref_conv, rtol=5e-3, atol=5e-5)
    assert jnp.allclose(y_conv_2mm, ref_conv, rtol=5e-3, atol=5e-5)
    assert jnp.allclose(y_conv_res, ref_conv_res, rtol=5e-3, atol=5e-5)

    # ---------------- Tiny-spatial conv (H*W < 128): lane-density guard path ----------------
    Hs = Ws = 8
    x_small = jax.random.normal(ks[8], (Bc, Cc, Hs, Ws), dtype=jnp.float32)
    xs_perm = jnp.transpose(x_small, (0, 2, 3, 1))
    ref_small = jnp.transpose(((xs_perm @ wd_conv.T) @ wu_conv.T) * scale_conv, (0, 3, 1, 2))
    y_small = lora_forward_conv1x1(x_small, wd_conv, wu_conv, alpha_conv)
    jax.block_until_ready(y_small)
    assert jnp.allclose(y_small, ref_small, rtol=5e-3, atol=5e-5)

    print("KERNEL_OK")
</pallas_src>

<mosaic_0001>
module attributes {stable_mosaic.version = 11 : i64} {
  func.func @kernel(%arg0: i32, %arg1: memref<16x32xf32, #tpu.memory_space<vmem>>, %arg2: memref<32x32xf32, #tpu.memory_space<vmem>>, %arg3: memref<16x32xf32, #tpu.memory_space<vmem>>) attributes {dimension_semantics = [#tpu.dimension_semantics<parallel>], iteration_bounds = array<i64: 1>, scalar_prefetch = 0 : i64, scratch_operands = 0 : i64, tpu.core_type = #tpu.core_type<tc>, window_params = [{transform_indices = @transform_0, window_bounds = array<i64: 16, 32>}, {pipeline_mode = #tpu.pipeline_mode<synchronous>, transform_indices = @transform_1, window_bounds = array<i64: 32, 32>}, {transform_indices = @transform_2, window_bounds = array<i64: 16, 32>}]} {
    %c0 = arith.constant 0 : index
    %c0_0 = arith.constant 0 : index
    %0 = vector.load %arg1[%c0, %c0_0] : memref<16x32xf32, #tpu.memory_space<vmem>>, vector<16x32xf32>
    %c0_1 = arith.constant 0 : index
    %c0_2 = arith.constant 0 : index
    %1 = vector.load %arg2[%c0_1, %c0_2] : memref<32x32xf32, #tpu.memory_space<vmem>>, vector<32x32xf32>
    %cst = arith.constant dense<0.000000e+00> : vector<16x32xf32>
    %2 = tpu.matmul %0, %1, %cst {dimension_numbers = #tpu.dot_dimension_numbers<[1], [0], [0], [1], [0, 0, 1, 1], [], []>} : vector<16x32xf32>, vector<32x32xf32>, vector<16x32xf32> -> vector<16x32xf32>
    %c0_3 = arith.constant 0 : index
    %c0_4 = arith.constant 0 : index
    %3 = vector.load %arg3[%c0_3, %c0_4] : memref<16x32xf32, #tpu.memory_space<vmem>>, vector<16x32xf32>
    tpu.vector_store %arg3[%c0_3, %c0_4], %2 {strides = array<i32>} : memref<16x32xf32, #tpu.memory_space<vmem>>, vector<16x32xf32>,
    return
  }
  func.func @transform_0(%arg0: i32) -> (i32, i32) {
    %c0_i32 = arith.constant 0 : i32
    %c0_i32_0 = arith.constant 0 : i32
    return %arg0, %c0_i32 : i32, i32
  }
  func.func @transform_1(%arg0: i32) -> (i32, i32) {
    %c0_i32 = arith.constant 0 : i32
    %c0_i32_0 = arith.constant 0 : i32
    %c0_i32_1 = arith.constant 0 : i32
    return %c0_i32, %c0_i32_0 : i32, i32
  }
  func.func @transform_2(%arg0: i32) -> (i32, i32) {
    %c0_i32 = arith.constant 0 : i32
    %c0_i32_0 = arith.constant 0 : i32
    return %arg0, %c0_i32 : i32, i32
  }
}

</mosaic_0001>

<bundles_post_ra>
// kernel: tpu_custom_call.1
= control target key start
LH: loop header
LB: loop body
LE: loop exit
PB: predicated region body
PF: predicated region fallthrough
CT: control target
= control target key end

     0   :  { %7 = vsyncpa [#allocation3], 0  ;;  %s229_s0 = inlined_call_operand.hbm [shape: f32[16,32], index: 0, kind: input, shape index: {}]   ;;  %s230_s1 = inlined_call_operand.hbm [shape: f32[32,32], index: 1, kind: input, shape index: {}]   ;;  %s231_s2 = inlined_call_operand.hbm [shape: f32[16,32], index: 2, kind: output, shape index: {}]  }
   0x1   :  { %8 = vsyncpa [#allocation6], 0 }
   0x2   :  { %9 = vsyncpa [#allocation4], 0  ;;  %s14_s11 = sshll.u32 %s229_s0, 4  ;;  %s191_s12 = smov [#allocation2]   ;;  %s15_s11 = int_to_ptr.hbm [resolvable:$true] %s14_s11 }
   0x3   :  { %s16_s13 = sshll.u32 %s191_s12, 4  ;;  %s27_s16 = sshll.u32 %s230_s1, 4  ;;  %s17_s13 = int_to_ptr.vmem [resolvable:$true] %s16_s13  ;;  %s28_s16 = int_to_ptr.hbm [resolvable:$true] %s27_s16 }
   0x4   :  { %s192_s17 = smov 128   ;;  %s193_s18 = smov 8  }
   0x5   :  { %22 = dma.hbm_to_vmem [thread:$0]  %s15_s11, 256, %s17_s13, [#allocation3], %s192_s17, %s192_s17, %s193_s18  }
   0x6   :  { %s194_s19 = smov [#allocation5]  }
   0x7   :  { %s29_s20 = sshll.u32 %s194_s19, 4  ;;  %s30_s20 = int_to_ptr.vmem [resolvable:$true] %s29_s20 }
   0x8   :  { %35 = dma.hbm_to_vmem [thread:$0]  %s28_s16, 512, %s30_s20, [#allocation6], %s192_s17, %s192_s17, %s193_s18  }
   0x9   :  { %185 = dma.done.wait [#allocation3], 256  }
   0xa   :  { %186 = vsyncadd [#allocation3], 4294967040 }
   0xb   :  { %187 = dma.done.wait [#allocation6], 512  }
   0xc   :  { %188 = vsyncadd [#allocation6], 4294966784  ;;  %v49_v0 = vld [vmem:[#allocation5 + $0x18] sm:$0xff]  ;;  %v48_v1 = vld [vmem:[#allocation5 + $0x10] sm:$0xff]  ;;  %vm50_vm0 = vcmask 261120   ;;  %s195_s0 = smov [#allocation7]  }
   0xd   :  { %69 = vmatpush.msra.mxu0 %v49_v0  ;;  %104 = vmatpush.msra.mxu1 %v49_v0  ;;  %v47_v2 = vld [vmem:[#allocation5 + $0x8] sm:$0xff]  ;;  %v46_v3 = vld [vmem:[#allocation5] sm:$0xff]  ;;  %v44_v4 = vld [vmem:[#allocation2] sm:$0xff]  ;;  %s86_s1 = sshll.u32 %s195_s0, 4  ;;  %s88_s23 = sshll.u32 %s231_s2, 4  ;;  %s87_s1 = int_to_ptr.vmem [resolvable:$true] %s86_s1  ;;  %s89_s23 = int_to_ptr.hbm [resolvable:$true] %s88_s23 }
   0xe   :  { %v45_v5 = vld [vmem:[#allocation2 + $0x8] sm:$0xff] }
   0xf   :  { %70 = vmatpush.msra.mxu0 %v48_v1  ;;  %105 = vmatpush.msra.mxu1 %v48_v1 }
  0x11   :  { %71 = vmatpush.msra.mxu0 %v47_v2  ;;  %106 = vmatpush.msra.mxu1 %v47_v2 }
  0x13   :  { %72 = vmatpush.msra.mxu0 %v46_v3  ;;  %107 = vmatpush.msra.mxu1 %v46_v3 }
  0x14   :  { %102 = vmatmul.msk.f32.vlgmr.msra.gmra.mxu0 %vm50_vm0, %v44_v4  ;;  %103 = vmatmul.msk.f32.vlgmr.msra.gmra.mxu1 %vm50_vm0, %v45_v5 }
  0x91   :  { %v74_v6 = vpop.f32.mrf.mxu0  ;;  %v77_v7 = vpop.f32.mrf.mxu1 }
  0x92   :  { %80 = vst.msk [vmem:[#allocation7] sm:$0xff] %vm50_vm0, %v74_v6 }
  0x93   :  { %81 = vst.msk [vmem:[#allocation7 + $0x8] sm:$0xff] %vm50_vm0, %v77_v7 }
  0x94   :  { %94 = dma.vmem_to_hbm [thread:$0]  %s87_s1, 256, %s89_s23, [#allocation4], %s192_s17, %s192_s17, %s193_s18  }
  0x95   :  { %189 = dma.done.wait [#allocation4], 256  }
  0x96   :  { %190 = vsyncadd [#allocation4], 4294967040 }
  0x97   :  { %99 = vsyncpa [#allocation3], 1 }
  0x98   :  { %100 = vsyncpa [#allocation6], 1 }
  0x99   :  { %101 = vsyncpa [#allocation4], 1 }

</bundles_post_ra>
